<compile_context>
chip_gen: v6e
topology: v6e:2x2x1
jax: 0.10.0
libtpu: 0.0.40
codegen_flags: <defaults>
</compile_context>

<pallas_src>
import functools

import jax
import jax.numpy as jnp
from jax.experimental import pallas as pl
from jax.experimental.pallas import tpu as pltpu


def _round_up(x, m):
    return (x + m - 1) // m * m


def _vmem_capacity_bytes():
    try:
        return int(pltpu.get_tpu_info().vmem_capacity_bytes)
    except Exception:
        return 64 * 1024 * 1024  # conservative (v7x-sized) fallback


def _gcn_fused_kernel(a_ref, xs_ref, dcol_ref, drow_ref, w1_ref, b1_ref,
                      w2_ref, b2_ref, o_ref, p2_ref, s_ref,
                      *, n_real, tm, compute_dtype):
    """Single-pass fused GCN over row tiles of the raw int8 adjacency.

    Per tile i:
      h1   = relu(d_col * ((A_tile @ Xs) @ W1) + b1)        (Xs = D^{-1/2} X)
      P2'[tile] = d_col * (h1 @ W2)                          -> f32 VMEM scratch
      s   += d_row_tile @ A_tile                             (weighted colsum)
    Last tile epilogue:
      out = (s @ P2') / n + b2
    """
    i = pl.program_id(0)
    n_tiles = pl.num_programs(0)

    @pl.when(i == 0)
    def _():
        s_ref[...] = jnp.zeros_like(s_ref)

    # int8 0/1 adjacency tile -> bf16 for the MXU (exact).
    a = a_ref[...].astype(compute_dtype)                       # (tm, n_pad)

    # Layer 1, reassociated: (A @ (D^{-1/2} X)) @ W1, then left D^{-1/2} scaling.
    ax = jnp.dot(a, xs_ref[...], preferred_element_type=jnp.float32)
    h1 = jnp.dot(ax.astype(compute_dtype), w1_ref[...],
                 preferred_element_type=jnp.float32)
    h1 = jnp.maximum(dcol_ref[...] * h1 + b1_ref[...], 0.0)    # (tm, h_pad) f32

    # Layer-2 projection for this tile: P2' = D^{-1/2} (H1 @ W2), kept in f32.
    p2 = jnp.dot(h1.astype(compute_dtype), w2_ref[...],
                 preferred_element_type=jnp.float32)
    p2 = dcol_ref[...] * p2                                     # (tm, c_pad) f32
    start = pl.multiple_of(i * tm, tm)
    p2_ref[pl.ds(start, tm), :] = p2

    # Fused mean_nodes readout, part 1: weighted column-sum of A.
    # Padded A rows / d entries are zero, so no mask is needed.
    s_ref[...] += jnp.dot(drow_ref[...], a,
                          preferred_element_type=jnp.float32)   # (1, n_pad) f32

    @pl.when(i == n_tiles - 1)
    def _():
        out = jnp.dot(s_ref[...], p2_ref[...],
                      preferred_element_type=jnp.float32)       # (1, c_pad) f32
        o_ref[...] = out * (1.0 / n_real) + b2_ref[...]


def gcn_forward(adj, x, params, *, compute_dtype=jnp.bfloat16):
    """Fused GCN forward. adj is the raw (0/1) dense adjacency.

    Returns [1, num_classes] (dgl.mean_nodes readout of the second GraphConv).
    """
    w1, b1, w2, b2 = params
    n, in_feats = x.shape
    h_feats = w1.shape[1]
    num_classes = w2.shape[1]

    # Symmetric-norm factors d^{-1/2} (DGL GraphConv norm='both').  Folding the
    # normalization into a per-node vector lets A stay as raw 0/1 int8 in HBM.
    adj_f = adj.astype(jnp.float32)
    deg = jnp.sum(adj_f, axis=1)
    d_inv_sqrt = jnp.where(deg > 0.0, jax.lax.rsqrt(deg), 0.0)  # (n,)

    # Lane-dense feature dims (zero padding is numerically inert; output is
    # sliced back to num_classes below).
    f_pad = _round_up(in_feats, 128)
    h_pad = _round_up(h_feats, 128)
    c_pad = _round_up(num_classes, 128)

    # Row tile: 512 on 128-MiB-VMEM parts (v5e/v6e), 256 on 64-MiB (v7x).
    vmem_cap = _vmem_capacity_bytes()
    tm_target = 512 if vmem_cap >= 96 * 1024 * 1024 else 256
    if n <= tm_target:
        tm = _round_up(max(n, 1), 128)
        n_pad = tm
    else:
        tm = tm_target
        n_pad = _round_up(n, tm)
    n_tiles = n_pad // tm

    def pad2(m, r, c):
        return jnp.pad(m, ((0, r - m.shape[0]), (0, c - m.shape[1])))

    # Raw 0/1 adjacency as int8 (exact); padded rows/cols are zero.  The
    # pad/cast runs under the same jit as the kernel so XLA fuses the prep.
    a_p = pad2(adj_f, n_pad, n_pad).astype(jnp.int8)
    # Right-normalized features D^{-1/2} X (tiny vs the N^2 adjacency).
    xs_p = pad2(x * d_inv_sqrt[:, None], n_pad, f_pad).astype(compute_dtype)
    d_pad = jnp.pad(d_inv_sqrt, (0, n_pad - n))
    dcol_p = d_pad[:, None].astype(jnp.float32)       # (n_pad, 1) row scaling
    drow_p = d_pad[None, :].astype(compute_dtype)     # (1, n_pad) readout weights
    w1_p = pad2(w1, f_pad, h_pad).astype(compute_dtype)
    w2_p = pad2(w2, h_pad, c_pad).astype(compute_dtype)
    b1_p = pad2(b1, 1, h_pad).astype(jnp.float32)
    b2_p = pad2(b2, 1, c_pad).astype(jnp.float32)

    kernel = functools.partial(_gcn_fused_kernel, n_real=n, tm=tm,
                               compute_dtype=compute_dtype)

    elt_c = jnp.dtype(compute_dtype).itemsize

    # Advisory cost estimate (single pass over int8 A).
    flops = (2 * n_pad * n_pad * f_pad        # A @ (D^-1/2 X)
             + 2 * n_pad * f_pad * h_pad      # (.) @ W1
             + 2 * n_pad * h_pad * c_pad      # H1 @ W2
             + 2 * n_pad * n_pad              # d^T A (weighted column-sum)
             + 2 * n_pad * c_pad)             # s @ P2 readout
    bytes_accessed = (n_pad * n_pad * 1                       # A, int8, once
                      + n_pad * f_pad * elt_c
                      + (f_pad * h_pad + h_pad * c_pad) * elt_c
                      + n_pad * (4 + elt_c)
                      + (h_pad + 2 * c_pad) * 4)

    # VMEM footprint: double-buffered A tile, (double-buffered) resident
    # operands, f32 P2'/s scratches, and the in-kernel transients.
    vmem_est = (2 * tm * n_pad * 1                      # int8 A tile (2 bufs)
                + tm * n_pad * elt_c                    # in-kernel bf16 cast
                + 2 * n_pad * f_pad * elt_c             # Xs
                + 2 * (f_pad * h_pad + h_pad * c_pad) * elt_c  # W1, W2
                + n_pad * c_pad * 4                     # P2' scratch (f32)
                + 3 * n_pad * (4 + elt_c)               # d vectors, s
                + tm * (f_pad + h_pad + 2 * c_pad) * 4  # f32 transients
                + 8 * (h_pad + c_pad) * 4)              # biases / out

    compiler_kwargs = dict(dimension_semantics=("arbitrary",))
    # Smallest default scoped-VMEM limit across generations is 16 MiB (v5e);
    # raise it whenever the estimate gets close, leaving physical headroom.
    if vmem_est > 12 * 1024 * 1024:
        cap = min(int(vmem_cap * 0.85), 100 * 1024 * 1024)
        compiler_kwargs["vmem_limit_bytes"] = int(
            min(max(int(1.5 * vmem_est), 32 * 1024 * 1024), cap))

    out = pl.pallas_call(
        kernel,
        out_shape=jax.ShapeDtypeStruct((1, c_pad), jnp.float32),
        grid_spec=pltpu.PrefetchScalarGridSpec(
            num_scalar_prefetch=0,
            grid=(n_tiles,),                                     # row tiles only
            in_specs=[
                pl.BlockSpec((tm, n_pad), lambda i: (i, 0)),     # A row tile (int8)
                pl.BlockSpec((n_pad, f_pad), lambda i: (0, 0)),  # D^-1/2 X
                pl.BlockSpec((tm, 1), lambda i: (i, 0)),         # d^-1/2 (column)
                pl.BlockSpec((1, tm), lambda i: (0, i)),         # d^-1/2 (row)
                pl.BlockSpec((f_pad, h_pad), lambda i: (0, 0)),  # W1
                pl.BlockSpec((1, h_pad), lambda i: (0, 0)),      # b1
                pl.BlockSpec((h_pad, c_pad), lambda i: (0, 0)),  # W2
                pl.BlockSpec((1, c_pad), lambda i: (0, 0)),      # b2
            ],
            out_specs=pl.BlockSpec((1, c_pad), lambda i: (0, 0)),
            scratch_shapes=[
                pltpu.VMEM((n_pad, c_pad), jnp.float32),   # P2' = D^-1/2 H1 W2
                pltpu.VMEM((1, n_pad), jnp.float32),       # s = d^T A accumulator
            ],
        ),
        compiler_params=pltpu.CompilerParams(**compiler_kwargs),
        cost_estimate=pl.CostEstimate(flops=int(flops), transcendentals=0,
                                      bytes_accessed=int(bytes_accessed)),
    )(a_p, xs_p, dcol_p, drow_p, w1_p, b1_p, w2_p, b2_p)

    return out[:, :num_classes]


def init_params(key, in_feats, h_feats, num_classes):
    k1, k2 = jax.random.split(key)
    lim1 = jnp.sqrt(6.0 / (in_feats + h_feats))
    lim2 = jnp.sqrt(6.0 / (h_feats + num_classes))
    w1 = jax.random.uniform(k1, (in_feats, h_feats), jnp.float32, -lim1, lim1)
    b1 = jnp.zeros((1, h_feats), jnp.float32)
    w2 = jax.random.uniform(k2, (h_feats, num_classes), jnp.float32, -lim2, lim2)
    b2 = jnp.zeros((1, num_classes), jnp.float32)
    return w1, b1, w2, b2


def gcn_reference(adj, x, params):
    """Plain-JAX f32 reference (symmetric normalization, 2 convs, mean nodes)."""
    w1, b1, w2, b2 = params
    deg = jnp.sum(adj, axis=1)
    dis = jnp.where(deg > 0, 1.0 / jnp.sqrt(deg), 0.0)
    a_norm = adj * dis[:, None] * dis[None, :]
    h = a_norm @ (x @ w1) + b1
    h = jnp.maximum(h, 0.0)
    h = a_norm @ (h @ w2) + b2
    return jnp.mean(h, axis=0, keepdims=True)


if __name__ == "__main__":
    key = jax.random.PRNGKey(0)
    k_adj, k_feat, k_param = jax.random.split(key, 3)

    num_nodes = 16
    in_feats = 8
    h_feats = 32
    num_classes = 4

    # Deterministic random undirected graph (dense 0/1 adjacency, no self-loops).
    raw = jax.random.uniform(k_adj, (num_nodes, num_nodes))
    adj = (raw + raw.T > 1.0).astype(jnp.float32)
    adj = adj * (1.0 - jnp.eye(num_nodes, dtype=jnp.float32))

    # Node features [N, in_feats]
    x = jax.random.normal(k_feat, (num_nodes, in_feats), jnp.float32)
    params = init_params(k_param, in_feats, h_feats, num_classes)

    gcn = jax.jit(gcn_forward)
    out = jax.block_until_ready(gcn(adj, x, params))
    assert out.shape == (1, num_classes)

    # Numerical sanity check vs. f32 reference (bf16 MXU inputs, f32 readout).
    ref = gcn_reference(adj, x, params)
    assert jnp.allclose(out, ref, atol=5e-2, rtol=5e-2), (out, ref)

    print("KERNEL_OK")
</pallas_src>

<mosaic_0001>
module attributes {stable_mosaic.version = 11 : i64} {
  func.func @_gcn_fused_kernel(%arg0: i32, %arg1: memref<128x128xi8, #tpu.memory_space<vmem>>, %arg2: memref<128x128xbf16, #tpu.memory_space<vmem>>, %arg3: memref<128x1xf32, #tpu.memory_space<vmem>>, %arg4: memref<1x128xbf16, #tpu.memory_space<vmem>>, %arg5: memref<128x128xbf16, #tpu.memory_space<vmem>>, %arg6: memref<1x128xf32, #tpu.memory_space<vmem>>, %arg7: memref<128x128xbf16, #tpu.memory_space<vmem>>, %arg8: memref<1x128xf32, #tpu.memory_space<vmem>>, %arg9: memref<1x128xf32, #tpu.memory_space<vmem>>, %arg10: memref<128x128xf32, #tpu.memory_space<vmem>>, %arg11: memref<1x128xf32, #tpu.memory_space<vmem>>) attributes {dimension_semantics = [#tpu.dimension_semantics<arbitrary>], iteration_bounds = array<i64: 1>, scalar_prefetch = 0 : i64, scratch_operands = 2 : i64, tpu.core_type = #tpu.core_type<tc>, window_params = [{transform_indices = @transform_0, window_bounds = array<i64: 128, 128>}, {pipeline_mode = #tpu.pipeline_mode<synchronous>, transform_indices = @transform_1, window_bounds = array<i64: 128, 128>}, {transform_indices = @transform_2, window_bounds = array<i64: 128, 1>}, {transform_indices = @transform_3, window_bounds = array<i64: 1, 128>}, {pipeline_mode = #tpu.pipeline_mode<synchronous>, transform_indices = @transform_4, window_bounds = array<i64: 128, 128>}, {pipeline_mode = #tpu.pipeline_mode<synchronous>, transform_indices = @transform_5, window_bounds = array<i64: 1, 128>}, {pipeline_mode = #tpu.pipeline_mode<synchronous>, transform_indices = @transform_6, window_bounds = array<i64: 128, 128>}, {pipeline_mode = #tpu.pipeline_mode<synchronous>, transform_indices = @transform_7, window_bounds = array<i64: 1, 128>}, {pipeline_mode = #tpu.pipeline_mode<synchronous>, transform_indices = @transform_8, window_bounds = array<i64: 1, 128>}]} {
    %c0_i32 = arith.constant 0 : i32
    %0 = arith.cmpi eq, %arg0, %c0_i32 : i32
    %1 = arith.extui %0 : i1 to i32
    %c0_i32_0 = arith.constant 0 : i32
    %2 = arith.cmpi ne, %1, %c0_i32_0 : i32
    scf.if %2 {
      %cst_27 = arith.constant 0.000000e+00 : f32
      %36 = vector.broadcast %cst_27 : f32 to vector<1x128xf32>
      %c0_28 = arith.constant 0 : index
      %c0_29 = arith.constant 0 : index
      %37 = vector.load %arg11[%c0_28, %c0_29] : memref<1x128xf32, #tpu.memory_space<vmem>>, vector<1x128xf32>
      tpu.vector_store %arg11[%c0_28, %c0_29], %36 {strides = array<i32>} : memref<1x128xf32, #tpu.memory_space<vmem>>, vector<1x128xf32>,
    } else {
    }
    %c0 = arith.constant 0 : index
    %c0_1 = arith.constant 0 : index
    %3 = vector.load %arg1[%c0, %c0_1] : memref<128x128xi8, #tpu.memory_space<vmem>>, vector<128x128xi8>
    %4 = arith.sitofp %3 : vector<128x128xi8> to vector<128x128xbf16>
    %c0_2 = arith.constant 0 : index
    %c0_3 = arith.constant 0 : index
    %5 = vector.load %arg2[%c0_2, %c0_3] : memref<128x128xbf16, #tpu.memory_space<vmem>>, vector<128x128xbf16>
    %cst = arith.constant dense<0.000000e+00> : vector<128x128xf32>
    %6 = tpu.matmul %4, %5, %cst {dimension_numbers = #tpu.dot_dimension_numbers<[1], [0], [0], [1], [0, 0, 1, 1], [], []>} : vector<128x128xbf16>, vector<128x128xbf16>, vector<128x128xf32> -> vector<128x128xf32>
    %7 = arith.truncf %6 : vector<128x128xf32> to vector<128x128xbf16>
    %c0_4 = arith.constant 0 : index
    %c0_5 = arith.constant 0 : index
    %8 = vector.load %arg5[%c0_4, %c0_5] : memref<128x128xbf16, #tpu.memory_space<vmem>>, vector<128x128xbf16>
    %cst_6 = arith.constant dense<0.000000e+00> : vector<128x128xf32>
    %9 = tpu.matmul %7, %8, %cst_6 {dimension_numbers = #tpu.dot_dimension_numbers<[1], [0], [0], [1], [0, 0, 1, 1], [], []>} : vector<128x128xbf16>, vector<128x128xbf16>, vector<128x128xf32> -> vector<128x128xf32>
    %c0_7 = arith.constant 0 : index
    %c0_8 = arith.constant 0 : index
    %10 = vector.load %arg3[%c0_7, %c0_8] : memref<128x1xf32, #tpu.memory_space<vmem>>, vector<128x1xf32>
    %11 = vector.broadcast %10 : vector<128x1xf32> to vector<128x128xf32>
    %12 = arith.mulf %11, %9 : vector<128x128xf32>
    %c0_9 = arith.constant 0 : index
    %c0_10 = arith.constant 0 : index
    %13 = vector.load %arg6[%c0_9, %c0_10] : memref<1x128xf32, #tpu.memory_space<vmem>>, vector<1x128xf32>
    %14 = vector.broadcast %13 : vector<1x128xf32> to vector<128x128xf32>
    %15 = arith.addf %12, %14 : vector<128x128xf32>
    %cst_11 = arith.constant 0.000000e+00 : f32
    %16 = vector.broadcast %cst_11 : f32 to vector<128x128xf32>
    %17 = arith.maximumf %15, %16 : vector<128x128xf32>
    %18 = arith.truncf %17 : vector<128x128xf32> to vector<128x128xbf16>
    %c0_12 = arith.constant 0 : index
    %c0_13 = arith.constant 0 : index
    %19 = vector.load %arg7[%c0_12, %c0_13] : memref<128x128xbf16, #tpu.memory_space<vmem>>, vector<128x128xbf16>
    %cst_14 = arith.constant dense<0.000000e+00> : vector<128x128xf32>
    %20 = tpu.matmul %18, %19, %cst_14 {dimension_numbers = #tpu.dot_dimension_numbers<[1], [0], [0], [1], [0, 0, 1, 1], [], []>} : vector<128x128xbf16>, vector<128x128xbf16>, vector<128x128xf32> -> vector<128x128xf32>
    %c0_15 = arith.constant 0 : index
    %c0_16 = arith.constant 0 : index
    %21 = vector.load %arg3[%c0_15, %c0_16] : memref<128x1xf32, #tpu.memory_space<vmem>>, vector<128x1xf32>
    %22 = vector.broadcast %21 : vector<128x1xf32> to vector<128x128xf32>
    %23 = arith.mulf %22, %20 : vector<128x128xf32>
    %c128_i32 = arith.constant 128 : i32
    %24 = arith.muli %arg0, %c128_i32 : i32
    %25 = tpu.assume_multiple %24, 128 : i32
    %26 = arith.index_cast %25 : i32 to index
    %c0_17 = arith.constant 0 : index
    %27 = vector.load %arg10[%26, %c0_17] : memref<128x128xf32, #tpu.memory_space<vmem>>, vector<128x128xf32>
    tpu.vector_store %arg10[%26, %c0_17], %23 {strides = array<i32>} : memref<128x128xf32, #tpu.memory_space<vmem>>, vector<128x128xf32>,
    %c0_18 = arith.constant 0 : index
    %c0_19 = arith.constant 0 : index
    %28 = vector.load %arg11[%c0_18, %c0_19] : memref<1x128xf32, #tpu.memory_space<vmem>>, vector<1x128xf32>
    %c0_20 = arith.constant 0 : index
    %c0_21 = arith.constant 0 : index
    %29 = vector.load %arg4[%c0_20, %c0_21] : memref<1x128xbf16, #tpu.memory_space<vmem>>, vector<1x128xbf16>
    %cst_22 = arith.constant dense<0.000000e+00> : vector<1x128xf32>
    %30 = tpu.matmul %29, %4, %cst_22 {dimension_numbers = #tpu.dot_dimension_numbers<[1], [0], [0], [1], [0, 0, 1, 1], [], []>} : vector<1x128xbf16>, vector<128x128xbf16>, vector<1x128xf32> -> vector<1x128xf32>
    %31 = arith.addf %28, %30 : vector<1x128xf32>
    %c0_23 = arith.constant 0 : index
    %c0_24 = arith.constant 0 : index
    %32 = vector.load %arg11[%c0_23, %c0_24] : memref<1x128xf32, #tpu.memory_space<vmem>>, vector<1x128xf32>
    tpu.vector_store %arg11[%c0_23, %c0_24], %31 {strides = array<i32>} : memref<1x128xf32, #tpu.memory_space<vmem>>, vector<1x128xf32>,
    %c0_i32_25 = arith.constant 0 : i32
    %33 = arith.cmpi eq, %arg0, %c0_i32_25 : i32
    %34 = arith.extui %33 : i1 to i32
    %c0_i32_26 = arith.constant 0 : i32
    %35 = arith.cmpi ne, %34, %c0_i32_26 : i32
    scf.if %35 {
      %c0_27 = arith.constant 0 : index
      %c0_28 = arith.constant 0 : index
      %36 = vector.load %arg11[%c0_27, %c0_28] : memref<1x128xf32, #tpu.memory_space<vmem>>, vector<1x128xf32>
      %c0_29 = arith.constant 0 : index
      %c0_30 = arith.constant 0 : index
      %37 = vector.load %arg10[%c0_29, %c0_30] : memref<128x128xf32, #tpu.memory_space<vmem>>, vector<128x128xf32>
      %cst_31 = arith.constant dense<0.000000e+00> : vector<1x128xf32>
      %38 = tpu.matmul %36, %37, %cst_31 {dimension_numbers = #tpu.dot_dimension_numbers<[1], [0], [0], [1], [0, 0, 1, 1], [], []>} : vector<1x128xf32>, vector<128x128xf32>, vector<1x128xf32> -> vector<1x128xf32>
      %cst_32 = arith.constant 6.250000e-02 : f32
      %39 = vector.broadcast %cst_32 : f32 to vector<1x128xf32>
      %40 = arith.mulf %38, %39 : vector<1x128xf32>
      %c0_33 = arith.constant 0 : index
      %c0_34 = arith.constant 0 : index
      %41 = vector.load %arg8[%c0_33, %c0_34] : memref<1x128xf32, #tpu.memory_space<vmem>>, vector<1x128xf32>
      %42 = arith.addf %40, %41 : vector<1x128xf32>
      %c0_35 = arith.constant 0 : index
      %c0_36 = arith.constant 0 : index
      %43 = vector.load %arg9[%c0_35, %c0_36] : memref<1x128xf32, #tpu.memory_space<vmem>>, vector<1x128xf32>
      tpu.vector_store %arg9[%c0_35, %c0_36], %42 {strides = array<i32>} : memref<1x128xf32, #tpu.memory_space<vmem>>, vector<1x128xf32>,
    } else {
    }
    return
  }
  func.func @transform_0(%arg0: i32) -> (i32, i32) {
    %c0_i32 = arith.constant 0 : i32
    %c0_i32_0 = arith.constant 0 : i32
    return %arg0, %c0_i32 : i32, i32
  }
  func.func @transform_1(%arg0: i32) -> (i32, i32) {
    %c0_i32 = arith.constant 0 : i32
    %c0_i32_0 = arith.constant 0 : i32
    %c0_i32_1 = arith.constant 0 : i32
    return %c0_i32, %c0_i32_0 : i32, i32
  }
  func.func @transform_2(%arg0: i32) -> (i32, i32) {
    %c0_i32 = arith.constant 0 : i32
    %c0_i32_0 = arith.constant 0 : i32
    return %arg0, %c0_i32 : i32, i32
  }
  func.func @transform_3(%arg0: i32) -> (i32, i32) {
    %c0_i32 = arith.constant 0 : i32
    %c0_i32_0 = arith.constant 0 : i32
    return %c0_i32, %arg0 : i32, i32
  }
  func.func @transform_4(%arg0: i32) -> (i32, i32) {
    %c0_i32 = arith.constant 0 : i32
    %c0_i32_0 = arith.constant 0 : i32
    %c0_i32_1 = arith.constant 0 : i32
    return %c0_i32, %c0_i32_0 : i32, i32
  }
  func.func @transform_5(%arg0: i32) -> (i32, i32) {
    %c0_i32 = arith.constant 0 : i32
    %c0_i32_0 = arith.constant 0 : i32
    %c0_i32_1 = arith.constant 0 : i32
    return %c0_i32, %c0_i32_0 : i32, i32
  }
  func.func @transform_6(%arg0: i32) -> (i32, i32) {
    %c0_i32 = arith.constant 0 : i32
    %c0_i32_0 = arith.constant 0 : i32
    %c0_i32_1 = arith.constant 0 : i32
    return %c0_i32, %c0_i32_0 : i32, i32
  }
  func.func @transform_7(%arg0: i32) -> (i32, i32) {
    %c0_i32 = arith.constant 0 : i32
    %c0_i32_0 = arith.constant 0 : i32
    %c0_i32_1 = arith.constant 0 : i32
    return %c0_i32, %c0_i32_0 : i32, i32
  }
  func.func @transform_8(%arg0: i32) -> (i32, i32) {
    %c0_i32 = arith.constant 0 : i32
    %c0_i32_0 = arith.constant 0 : i32
    %c0_i32_1 = arith.constant 0 : i32
    return %c0_i32, %c0_i32_0 : i32, i32
  }
}

</mosaic_0001>

<bundles_post_ra>
// kernel: gcn_forward.1
= control target key start
LH: loop header
LB: loop body
LE: loop exit
PB: predicated region body
PF: predicated region fallthrough
CT: control target
= control target key end

     0   :  { %s1530_s0 = inlined_call_operand.vmem [shape: s8[128,128], index: 0, kind: input, shape index: {}]   ;;  %s1531_s1 = inlined_call_operand.vmem [shape: bf16[128,128], index: 1, kind: input, shape index: {}]   ;;  %s1532_s2 = inlined_call_operand.vmem [shape: f32[128,1], index: 2, kind: input, shape index: {}]   ;;  %s1533_s3 = inlined_call_operand.vmem [shape: bf16[1,128], index: 3, kind: input, shape index: {}]   ;;  %s1534_s4 = inlined_call_operand.vmem [shape: bf16[128,128], index: 4, kind: input, shape index: {}]   ;;  %s1535_s5 = inlined_call_operand.vmem [shape: f32[1,128], index: 5, kind: input, shape index: {}]   ;;  %s1536_s6 = inlined_call_operand.vmem [shape: bf16[128,128], index: 6, kind: input, shape index: {}]   ;;  %s1537_s7 = inlined_call_operand.vmem [shape: f32[1,128], index: 7, kind: input, shape index: {}]   ;;  %s1538_s8 = inlined_call_operand.hbm [shape: f32[1,128], index: 8, kind: output, shape index: {}]  }
   0x1   :  { %v1140_v0 = vld [vmem:[%s1531_s1 + $0x38] sm:$0xff]   ;;  %v1141_v1 = vld [vmem:[%s1531_s1 + $0x30] sm:$0xff]   ;;  %v1142_v2 = vld [vmem:[%s1531_s1 + $0x28] sm:$0xff]  }
   0x2   :  { %983 = vmatprep.subr.bf16.mxu0 %v1140_v0  ;;  %v1143_v3 = vld [vmem:[%s1531_s1 + $0x20] sm:$0xff]   ;;  %v1148_v6 = vld [vmem:[%s1534_s4 + $0x38] sm:$0xff]   ;;  %v1149_v7 = vld [vmem:[%s1534_s4 + $0x30] sm:$0xff]  }
   0x3   :  { %984 = vmatpush3.bf16.msra.mxu0 %v1140_v0  ;;  %v1250_v4 = vld [vmem:[%s1530_s0] sm:$0xff]  ;;  %v1144_v8 = vld [vmem:[%s1531_s1 + $0x18] sm:$0xff]   ;;  %1015 = vmatprep.subr.bf16.mxu1 %v1148_v6  ;;  %v1150_v9 = vld [vmem:[%s1534_s4 + $0x28] sm:$0xff]  }
   0x4   :  { %985 = vmatprep.subr.bf16.mxu0 %v1141_v1  ;;  %v40_v5 = vunpack.c.l.s8.bf16 %v1250_v4  ;;  %1016 = vmatpush3.bf16.msra.mxu1 %v1148_v6  ;;  %v1145_v10 = vld [vmem:[%s1531_s1 + $0x10] sm:$0xff]   ;;  %v1151_v11 = vld [vmem:[%s1534_s4 + $0x20] sm:$0xff]   ;;  %v1146_v12 = vld [vmem:[%s1531_s1 + $0x8] sm:$0xff]  }
   0x5   :  { %1017 = vmatprep.subr.bf16.mxu1 %v1149_v7  ;;  %v1152_v13 = vld [vmem:[%s1534_s4 + $0x18] sm:$0xff]  }
   0x6   :  { %999 = vmatprep.mubr.bf16.mxu0 %v40_v5 }
   0x7   :  { %986 = vmatpush3.bf16.msra.mxu0 %v1141_v1 }
   0x8   :  { %987 = vmatprep.subr.bf16.mxu0 %v1142_v2  ;;  %1018 = vmatpush3.bf16.msra.mxu1 %v1149_v7 }
   0x9   :  { %1019 = vmatprep.subr.bf16.mxu1 %v1150_v9 }
   0xb   :  { %988 = vmatpush3.bf16.msra.mxu0 %v1142_v2 }
   0xc   :  { %989 = vmatprep.subr.bf16.mxu0 %v1143_v3  ;;  %1020 = vmatpush3.bf16.msra.mxu1 %v1150_v9 }
   0xd   :  { %1021 = vmatprep.subr.bf16.mxu1 %v1151_v11 }
   0xf   :  { %990 = vmatpush3.bf16.msra.mxu0 %v1143_v3 }
  0x10   :  { %991 = vmatprep.subr.bf16.mxu0 %v1144_v8 }
  0x13   :  { %992 = vmatpush3.bf16.msra.mxu0 %v1144_v8 }
  0x14   :  { %993 = vmatprep.subr.bf16.mxu0 %v1145_v10 }
  0x15   :  { %13 = vsyncpa [#allocation5], 0  ;;  %v1147_v14 = vld [vmem:[%s1531_s1] sm:$0xff]   ;;  %1022 = vmatpush3.bf16.msra.mxu1 %v1151_v11  ;;  %v1153_v15 = vld [vmem:[%s1534_s4 + $0x10] sm:$0xff]   ;;  %v41_v17 = vunpack.c.h.s8.bf16 %v1250_v4  ;;  %v1186_v30 = vmov 0   ;;  %vm1188_vm0 = vmmov 0  }
  0x16   :  { %1023 = vmatprep.subr.bf16.mxu1 %v1152_v13  ;;  %v1288_v16 = vld [vmem:[%s1530_s0 + $0x8] sm:$0xff]  ;;  %v1299_v19 = vld [vmem:[%s1530_s0 + $0x10] sm:$0xff]  ;;  %v1310_v22 = vld [vmem:[%s1530_s0 + $0x18] sm:$0xff]  ;;  %1138 = vset.pattern.permute.xlu0 %v1186_v30  ;;  %s1189_s21 = smov [#allocation4]  }
  0x17   :  { %994 = vmatpush3.bf16.msra.mxu0 %v1145_v10  ;;  %v42_v18 = vunpack.c.l.s8.bf16 %v1288_v16  ;;  %v43_v20 = vunpack.c.h.s8.bf16 %v1288_v16  ;;  %v44_v21 = vunpack.c.l.s8.bf16 %v1299_v19  ;;  %v45_v23 = vunpack.c.h.s8.bf16 %v1299_v19  ;;  %v1154_v26 = vld [vmem:[%s1534_s4 + $0x8] sm:$0xff]   ;;  %v1155_v27 = vld [vmem:[%s1534_s4] sm:$0xff]   ;;  %v380_v29 = vld [vmem:[%s1532_s2 + $0x10] sm:$0xff]  ;;  %1139 = vset.pattern.permute.xlu1 %v1186_v30  ;;  %s876_s22 = sshll.u32 %s1189_s21, 4  ;;  %s877_s22 = int_to_ptr.vmem [resolvable:$true] %s876_s22 }
  0x18   :  { %995 = vmatprep.subr.bf16.mxu0 %v1146_v12  ;;  %v46_v24 = vunpack.c.l.s8.bf16 %v1310_v22  ;;  %v47_v25 = vunpack.c.h.s8.bf16 %v1310_v22  ;;  %v378_v28 = vld [vmem:[%s1532_s2] sm:$0xff]  ;;  %406 = vperm.xlu1 %1139, %v380_v29   ;;  %v379_v31 = vld [vmem:[%s1532_s2 + $0x8] sm:$0xff]  ;;  %v381_v32 = vld [vmem:[%s1532_s2 + $0x18] sm:$0xff]  ;;  %s1164_s23 = scalar_lea.vmem %s877_s22, 16  ;;  %s1168_s24 = scalar_lea.vmem %s877_s22, 32 }
  0x19   :  { %1024 = vmatpush3.bf16.msra.mxu1 %v1152_v13  ;;  %396 = vperm.xlu0 %1138, %v378_v28   ;;  %v1156_v33 = vld [vmem:[%s1536_s6 + $0x38] sm:$0xff]   ;;  %v382_v34 = vld [vmem:[%s1532_s2 + $0x20] sm:$0xff]  ;;  %v383_v35 = vld [vmem:[%s1532_s2 + $0x28] sm:$0xff]  ;;  %p1165_p0 = scmp.ne.s32.totalorder %s877_s22, %s1164_s23  ;;  %p1169_p1 = scmp.lt.s32.totalorder %s877_s22, %s877_s22 }
  0x1a   :  { %1025 = vmatprep.subr.bf16.mxu1 %v1153_v15  ;;  %v1157_v36 = vld [vmem:[%s1536_s6 + $0x30] sm:$0xff]   ;;  %v385_v38 = vld [vmem:[%s1532_s2 + $0x38] sm:$0xff]  ;;  %v1158_v39 = vld [vmem:[%s1536_s6 + $0x28] sm:$0xff]   ;;  %p1170_p2 = scmp.lt.s32.totalorder %s1168_s24, %s1164_s23 }
  0x1b   :  { %996 = vmatpush3.bf16.msra.mxu0 %v1146_v12  ;;  %v384_v37 = vld [vmem:[%s1532_s2 + $0x30] sm:$0xff]  ;;  %v386_v40 = vld [vmem:[%s1532_s2 + $0x40] sm:$0xff]  ;;  %v387_v41 = vld [vmem:[%s1532_s2 + $0x48] sm:$0xff] }
  0x1c   :  { %997 = vmatprep.subr.bf16.mxu0 %v1147_v14  ;;  %411 = vperm.xlu1 %1139, %v381_v32   ;;  %v1159_v42 = vld [vmem:[%s1536_s6 + $0x20] sm:$0xff]   ;;  %v388_v43 = vld [vmem:[%s1532_s2 + $0x50] sm:$0xff]  ;;  %v389_v44 = vld [vmem:[%s1532_s2 + $0x58] sm:$0xff]  ;;  %p1171_p3 = por %p1170_p2, %p1169_p1 }
  0x1d   :  { %1026 = vmatpush3.bf16.msra.mxu1 %v1153_v15  ;;  %401 = vperm.xlu0 %1138, %v379_v31   ;;  %v390_v45 = vld [vmem:[%s1532_s2 + $0x60] sm:$0xff]  ;;  %v391_v46 = vld [vmem:[%s1532_s2 + $0x68] sm:$0xff]  ;;  %v392_v47 = vld [vmem:[%s1532_s2 + $0x70] sm:$0xff]  ;;  %v1187_v15 = vmov 0.0  }
  0x1e   :  { %1027 = vmatprep.subr.bf16.mxu1 %v1154_v26  ;;  %v393_v48 = vld [vmem:[%s1532_s2 + $0x78] sm:$0xff]  ;;  %v1161_v12 = vld [vmem:[%s1536_s6 + $0x10] sm:$0xff]   ;;  %v1162_v13 = vld [vmem:[%s1536_s6 + $0x8] sm:$0xff]   ;;  %35 = vst [vmem:[#allocation3] sm:$0x1] %v1187_v15  ;;  %p1172_p4 = pnand %p1171_p3, %p1165_p0 }
  0x1f   :  { %998 = vmatpush3.bf16.msra.mxu0 %v1147_v14  ;;  %v1160_v11 = vld [vmem:[%s1536_s6 + $0x18] sm:$0xff]   ;;  %v1163_v14 = vld [vmem:[%s1536_s6] sm:$0xff]  }
  0x20   :  { %1047 = vmatprep.subr.bf16.mxu0 %v1156_v33  ;;  %421 = vperm.xlu1 %1139, %v383_v35   ;;  %v733_v19 = vld [vmem:[%s1533_s3] sm:$0x1] }
  0x21   :  { %1028 = vmatpush3.bf16.msra.mxu1 %v1154_v26  ;;  %416 = vperm.xlu0 %1138, %v382_v34   ;;  %v1451_v28 = vld [vmem:[%s1535_s5] ss:$0 sm:$0xff] }
  0x22   :  { %1000 = vmatmul.mubr.bf16.vlgmr.msra.gmra.mxu0 %v41_v17  ;;  %1029 = vmatprep.subr.bf16.mxu1 %v1155_v27 }
  0x23   :  { %1003 = vmatprep.mubr.bf16.mxu0 %v42_v18  ;;  %1048 = vmatpush3.bf16.msra.mxu0 %v1156_v33 }
  0x24   :  { %1049 = vmatprep.subr.bf16.mxu0 %v1157_v36  ;;  %431 = vperm.xlu1 %1139, %v385_v38  }
  0x25   :  { %1030 = vmatpush3.bf16.msra.mxu1 %v1155_v27  ;;  %426 = vperm.xlu0 %1138, %v384_v37  }
  0x26   :  { %1079 = vmatprep.subr.bf16.mxu1 %v1187_v15 }
  0x27   :  { %1050 = vmatpush3.bf16.msra.mxu0 %v1157_v36 }
  0x28   :  { %1051 = vmatprep.subr.bf16.mxu0 %v1158_v39  ;;  %441 = vperm.xlu1 %1139, %v387_v41  }
  0x29   :  { %436 = vperm.xlu0 %1138, %v386_v40  }
  0x2a   :  { %1004 = vmatmul.mubr.bf16.gmra.mxu0 %v43_v20 }
  0x2b   :  { %1007 = vmatprep.mubr.bf16.mxu0 %v44_v21  ;;  %1052 = vmatpush3.bf16.msra.mxu0 %v1158_v39 }
  0x2c   :  { %1053 = vmatprep.subr.bf16.mxu0 %v1159_v42  ;;  %451 = vperm.xlu1 %1139, %v389_v44  }
  0x2d   :  { %446 = vperm.xlu0 %1138, %v388_v43  }
  0x2f   :  { %1054 = vmatpush3.bf16.msra.mxu0 %v1159_v42 }
  0x30   :  { %461 = vperm.xlu1 %1139, %v391_v46   ;;  %1055 = vmatprep.subr.bf16.mxu0 %v1160_v11 }
  0x31   :  { %456 = vperm.xlu0 %1138, %v390_v45  }
  0x32   :  { %1008 = vmatmul.mubr.bf16.gmra.mxu0 %v45_v23 }
  0x33   :  { %1011 = vmatprep.mubr.bf16.mxu0 %v46_v24  ;;  %1056 = vmatpush3.bf16.msra.mxu0 %v1160_v11 }
  0x34   :  { %471 = vperm.xlu1 %1139, %v393_v48   ;;  %1057 = vmatprep.subr.bf16.mxu0 %v1161_v12 }
  0x35   :  { %466 = vperm.xlu0 %1138, %v392_v47  }
  0x37   :  { %1058 = vmatpush3.bf16.msra.mxu0 %v1161_v12 }
  0x38   :  { %1059 = vmatprep.subr.bf16.mxu0 %v1162_v13 }
  0x3a   :  { %1012 = vmatmul.mubr.bf16.gmra.mxu0 %v47_v25 }
  0x3b   :  { %1060 = vmatpush3.bf16.msra.mxu0 %v1162_v13 }
  0x3c   :  { %1061 = vmatprep.subr.bf16.mxu0 %v1163_v14 }
  0x3f   :  { %1062 = vmatpush3.bf16.msra.mxu0 %v1163_v14 }
  0x40   :  { %1099 = vmatprep.subr.mxu0 %v1187_v15 }
  0xe2   :  { %v1001_v49 = vpop.f32.mrf.mxu0 }
  0xe4   :  { %v146_v50 = vpop.f32.mrf.mxu0 }
  0xe6   :  { %v1002_v51 = vpop.f32.mrf.mxu0 }
  0xe7   :  { %v210_v54 = vpack.c.bf16 %v1002_v51, %v1001_v49 }
  0xe8   :  { %v149_v52 = vpop.f32.mrf.mxu0 }
  0xe9   :  { %v209_v53 = vpack.c.bf16 %v149_v52, %v146_v50 }
  0xea   :  { %v1005_v55 = vpop.f32.mrf.mxu0 }
  0xeb   :  { %1031 = vmatprep.mubr.bf16.mxu1 %v209_v53 }
  0xec   :  { %v162_v56 = vpop.f32.mrf.mxu0  ;;  %1032 = vmatmul.mubr.bf16.vlgmr.msra.gmra.mxu1 %v210_v54 }
  0xed   :  { %1080 = vmatpush3.bf16.msra.mxu1 %v47_v25 }
  0xee   :  { %v1006_v57 = vpop.f32.mrf.mxu0  ;;  %1081 = vmatprep.subr.bf16.mxu1 %v1187_v15 }
  0xef   :  { %v212_v60 = vpack.c.bf16 %v1006_v57, %v1005_v55 }
  0xf0   :  { %v165_v58 = vpop.f32.mrf.mxu0 }
  0xf1   :  { %v211_v59 = vpack.c.bf16 %v165_v58, %v162_v56  ;;  %1082 = vmatpush3.bf16.msra.mxu1 %v46_v24 }
  0xf2   :  { %v1009_v61 = vpop.f32.mrf.mxu0  ;;  %1083 = vmatprep.subr.bf16.mxu1 %v1187_v15 }
  0xf3   :  { %1035 = vmatprep.mubr.bf16.mxu1 %v211_v59 }
  0xf4   :  { %v178_v62 = vpop.f32.mrf.mxu0  ;;  %1036 = vmatmul.mubr.bf16.gmra.mxu1 %v212_v60 }
  0xf5   :  { %1084 = vmatpush3.bf16.msra.mxu1 %v45_v23 }
  0xf6   :  { %v1010_v63 = vpop.f32.mrf.mxu0  ;;  %1085 = vmatprep.subr.bf16.mxu1 %v1187_v15 }
  0xf7   :  { %v214_v2 = vpack.c.bf16 %v1010_v63, %v1009_v61 }
  0xf8   :  { %v181_v0 = vpop.f32.mrf.mxu0 }
  0xf9   :  { %v213_v1 = vpack.c.bf16 %v181_v0, %v178_v62  ;;  %1086 = vmatpush3.bf16.msra.mxu1 %v44_v21  ;;  %v1432_v21 = vpop.permute.xlu1 %406 }
  0xfa   :  { %v1013_v3 = vpop.f32.mrf.mxu0  ;;  %1087 = vmatprep.subr.bf16.mxu1 %v1187_v15 }
  0xfb   :  { %1039 = vmatprep.mubr.bf16.mxu1 %v213_v1 }
  0xfc   :  { %v194_v6 = vpop.f32.mrf.mxu0  ;;  %1040 = vmatmul.mubr.bf16.gmra.mxu1 %v214_v2 }
  0xfd   :  { %1088 = vmatpush3.bf16.msra.mxu1 %v43_v20  ;;  %v1430_v20 = vpop.permute.xlu0 %396 }
  0xfe   :  { %v1014_v7 = vpop.f32.mrf.mxu0  ;;  %1089 = vmatprep.subr.bf16.mxu1 %v1187_v15 }
  0xff   :  { %v216_v10 = vpack.c.bf16 %v1014_v7, %v1013_v3 }
 0x100   :  { %v197_v8 = vpop.f32.mrf.mxu0 }
 0x101   :  { %v215_v9 = vpack.c.bf16 %v197_v8, %v194_v6  ;;  %1090 = vmatpush3.bf16.msra.mxu1 %v42_v18  ;;  %v1434_v16 = vpop.permute.xlu0 %401  ;;  %v1436_v18 = vpop.permute.xlu1 %411 }
 0x102   :  { %1091 = vmatprep.subr.bf16.mxu1 %v1187_v15 }
 0x103   :  { %1043 = vmatprep.mubr.bf16.mxu1 %v215_v9 }
 0x104   :  { %1044 = vmatmul.mubr.bf16.gmra.mxu1 %v216_v10 }
 0x105   :  { %1095 = vmatprep.mubr.msk.bf16.mxu1 %vm1188_vm0, %v1187_v15  ;;  %1092 = vmatpush3.bf16.msra.mxu1 %v41_v17  ;;  %v1438_v22 = vpop.permute.xlu0 %416  ;;  %v1440_v17 = vpop.permute.xlu1 %421 }
 0x106   :  { %1093 = vmatprep.subr.bf16.mxu1 %v1187_v15 }
 0x109   :  { %1094 = vmatpush3.bf16.msra.mxu1 %v40_v5  ;;  %v1442_v5 = vpop.permute.xlu0 %426  ;;  %v1445_v25 = vpop.permute.xlu1 %431 }
 0x10c   :  { %1096 = vmatmul.mubr.bf16.vlgmr.msra.gmra.mxu1 %v733_v19 }
 0x10d   :  { %v1458_v36 = vpop.permute.xlu0 %436  ;;  %v1461_v38 = vpop.permute.xlu1 %441 }
 0x111   :  { %v1466_v51 = vpop.permute.xlu0 %446  ;;  %v1471_v55 = vpop.permute.xlu1 %451 }
 0x115   :  { %v1477_v3 = vpop.permute.xlu0 %456  ;;  %v1480_v8 = vpop.permute.xlu1 %461 }
 0x1ac   :  { %v1033_v23 = vpop.f32.mrf.mxu1 }
 0x1ad   :  { %v476_v26 = vmul.f32 %v1033_v23, %v1432_v21 }
 0x1ae   :  { %v315_v4 = vpop.f32.mrf.mxu1 }
 0x1af   :  { %v474_v24 = vmul.f32 %v1430_v20, %v315_v4  ;;  %v499_v34 = vadd.f32 %v1451_v28, %v476_v26  ;;  %v467_v26 = vpop.permute.xlu0 %466 }
 0x1b0   :  { %v1034_v27 = vpop.f32.mrf.mxu1 }
 0x1b1   :  { %v477_v29 = vmul.f32 %v1034_v27, %v1436_v18  ;;  %v497_v31 = vadd.f32 %v1451_v28, %v474_v24  ;;  %v515_v44 = vmax.f32 %v499_v34, 0.0 }
 0x1b2   :  { %v318_v30 = vpop.f32.mrf.mxu1 }
 0x1b3   :  { %v500_v32 = vadd.f32 %v1451_v28, %v477_v29  ;;  %v475_v33 = vmul.f32 %v1434_v16, %v318_v30  ;;  %v513_v41 = vmax.f32 %v497_v31, 0.0  ;;  %v472_v31 = vpop.permute.xlu1 %471 }
 0x1b4   :  { %v1037_v35 = vpop.f32.mrf.mxu1 }
 0x1b5   :  { %v498_v37 = vadd.f32 %v1451_v28, %v475_v33  ;;  %v516_v39 = vmax.f32 %v500_v32, 0.0  ;;  %v480_v45 = vmul.f32 %v1037_v35, %v1442_v5 }
 0x1b6   :  { %v331_v40 = vpop.f32.mrf.mxu1 }
 0x1b7   :  { %v514_v42 = vmax.f32 %v498_v37, 0.0  ;;  %v478_v43 = vmul.f32 %v1438_v22, %v331_v40  ;;  %v530_v49 = vpack.c.bf16 %v516_v39, %v515_v44  ;;  %v503_v56 = vadd.f32 %v1451_v28, %v480_v45 }
 0x1b8   :  { %v1038_v46 = vpop.f32.mrf.mxu1 }
 0x1b9   :  { %v481_v47 = vmul.f32 %v1038_v46, %v1445_v25  ;;  %v529_v48 = vpack.c.bf16 %v514_v42, %v513_v41  ;;  %v501_v52 = vadd.f32 %v1451_v28, %v478_v43  ;;  %v519_v0 = vmax.f32 %v503_v56, 0.0 }
 0x1ba   :  { %v334_v50 = vpop.f32.mrf.mxu1 }
 0x1bb   :  { %v504_v53 = vadd.f32 %v1451_v28, %v481_v47  ;;  %v479_v54 = vmul.f32 %v1440_v17, %v334_v50  ;;  %1063 = vmatprep.mubr.bf16.mxu0 %v529_v48  ;;  %v517_v61 = vmax.f32 %v501_v52, 0.0 }
 0x1bc   :  { %v1041_v57 = vpop.f32.mrf.mxu1  ;;  %1064 = vmatmul.mubr.bf16.vlgmr.msra.gmra.mxu0 %v530_v49 }
 0x1bd   :  { %v502_v58 = vadd.f32 %v1451_v28, %v479_v54  ;;  %v520_v59 = vmax.f32 %v504_v53, 0.0  ;;  %v484_v1 = vmul.f32 %v1041_v57, %v1466_v51  ;;  %v732_v53 = vld [vmem:[#allocation3] sm:$0x1] }
 0x1be   :  { %v347_v60 = vpop.f32.mrf.mxu1 }
 0x1bf   :  { %v518_v62 = vmax.f32 %v502_v58, 0.0  ;;  %v482_v63 = vmul.f32 %v1458_v36, %v347_v60  ;;  %v532_v10 = vpack.c.bf16 %v520_v59, %v519_v0  ;;  %v507_v14 = vadd.f32 %v1451_v28, %v484_v1 }
 0x1c0   :  { %v1042_v2 = vpop.f32.mrf.mxu1 }
 0x1c1   :  { %v485_v6 = vmul.f32 %v1042_v2, %v1471_v55  ;;  %v531_v7 = vpack.c.bf16 %v518_v62, %v517_v61  ;;  %v505_v11 = vadd.f32 %v1451_v28, %v482_v63  ;;  %v523_v32 = vmax.f32 %v507_v14, 0.0 }
 0x1c2   :  { %v350_v9 = vpop.f32.mrf.mxu1 }
 0x1c3   :  { %v508_v12 = vadd.f32 %v1451_v28, %v485_v6  ;;  %v483_v13 = vmul.f32 %v1461_v38, %v350_v9  ;;  %1067 = vmatprep.mubr.bf16.mxu0 %v531_v7  ;;  %v521_v27 = vmax.f32 %v505_v11, 0.0 }
 0x1c4   :  { %v1045_v19 = vpop.f32.mrf.mxu1  ;;  %1068 = vmatmul.mubr.bf16.gmra.mxu0 %v532_v10 }
 0x1c5   :  { %v506_v23 = vadd.f32 %v1451_v28, %v483_v13  ;;  %v524_v4 = vmax.f32 %v508_v12, 0.0  ;;  %v488_v33 = vmul.f32 %v1045_v19, %v467_v26 }
 0x1c6   :  { %v363_v24 = vpop.f32.mrf.mxu1 }
 0x1c7   :  { %v522_v29 = vmax.f32 %v506_v23, 0.0  ;;  %v486_v30 = vmul.f32 %v1477_v3, %v363_v24  ;;  %v534_v40 = vpack.c.bf16 %v524_v4, %v523_v32  ;;  %v511_v44 = vadd.f32 %v1451_v28, %v488_v33 }
 0x1c8   :  { %v1046_v34 = vpop.f32.mrf.mxu1 }
 0x1c9   :  { %v489_v35 = vmul.f32 %v1046_v34, %v472_v31  ;;  %v533_v37 = vpack.c.bf16 %v522_v29, %v521_v27  ;;  %v509_v41 = vadd.f32 %v1451_v28, %v486_v30  ;;  %v527_v49 = vmax.f32 %v511_v44, 0.0 }
 0x1ca   :  { %v366_v39 = vpop.f32.mrf.mxu1 }
 0x1cb   :  { %v512_v42 = vadd.f32 %v1451_v28, %v489_v35  ;;  %v487_v43 = vmul.f32 %v1480_v8, %v366_v39  ;;  %1071 = vmatprep.mubr.bf16.mxu0 %v533_v37  ;;  %v525_v47 = vmax.f32 %v509_v41, 0.0 }
 0x1cc   :  { %1072 = vmatmul.mubr.bf16.gmra.mxu0 %v534_v40  ;;  %v768_v54 = vpop.f32.mrf.mxu1 }
 0x1cd   :  { %v510_v45 = vadd.f32 %v1451_v28, %v487_v43  ;;  %v528_v46 = vmax.f32 %v512_v42, 0.0  ;;  %v774_v56 = vadd.f32 %v768_v54, %v732_v53 }
 0x1ce   :  { %v1097_v57 = vpop.f32.mrf.mxu1 }
 0x1cf   :  { %v526_v48 = vmax.f32 %v510_v45, 0.0  ;;  %v536_v52 = vpack.c.bf16 %v528_v46, %v527_v49  ;;  %775 = vst [vmem:[#allocation3] sm:$0x1] %v774_v56 }
 0x1d0   :  { %v771_v58 = vpop.f32.mrf.mxu1 }
 0x1d1   :  { %v535_v50 = vpack.c.bf16 %v526_v48, %v525_v47 }
 0x1d2   :  { %v1098_v59 = vpop.f32.mrf.mxu1 }
 0x1d3   :  { %1075 = vmatprep.mubr.bf16.mxu0 %v535_v50 }
 0x1d4   :  { %1076 = vmatmul.mubr.bf16.gmra.mxu0 %v536_v52 }
 0x1d5   :  { %1131 = vmatprep.mubr.msk.f32.mxu0 %vm1188_vm0, %v1187_v15 }
 0x1d6   :  { %v779_v29 = vld [vmem:[#allocation3] sm:$0x1] }
 0x27c   :  { %v1065_v60 = vpop.f32.mrf.mxu0 }
 0x27e   :  { %v635_v28 = vpop.f32.mrf.mxu0 }
 0x280   :  { %v1066_v61 = vpop.f32.mrf.mxu0 }
 0x282   :  { %v638_v62 = vpop.f32.mrf.mxu0 }
 0x284   :  { %v1069_v63 = vpop.f32.mrf.mxu0 }
 0x286   :  { %v651_v0 = vpop.f32.mrf.mxu0 }
 0x288   :  { %v1070_v1 = vpop.f32.mrf.mxu0 }
 0x28a   :  { %v654_v2 = vpop.f32.mrf.mxu0 }
 0x28c   :  { %v1073_v6 = vpop.f32.mrf.mxu0 }
 0x28e   :  { %v667_v7 = vpop.f32.mrf.mxu0 }
 0x290   :  { %v1074_v9 = vpop.f32.mrf.mxu0 }
 0x291   :  { %v709_v27 = vmul.f32 %v1074_v9, %v1471_v55  ;;  %v705_v55 = vmul.f32 %v1070_v1, %v1445_v25  ;;  %v701_v25 = vmul.f32 %v1066_v61, %v1436_v18 }
 0x292   :  { %v670_v10 = vpop.f32.mrf.mxu0 }
 0x294   :  { %v1077_v11 = vpop.f32.mrf.mxu0 }
 0x295   :  { %v712_v23 = vmul.f32 %v1077_v11, %v467_v26  ;;  %v708_v26 = vmul.f32 %v1073_v6, %v1466_v51  ;;  %v704_v51 = vmul.f32 %v1069_v63, %v1442_v5  ;;  %v700_v5 = vmul.f32 %v1065_v60, %v1432_v21  ;;  %v867_v21 = vld [vmem:[%s1537_s7] sm:$0x1] }
 0x296   :  { %v683_v12 = vpop.f32.mrf.mxu0 }
 0x297   :  { %v710_v24 = vmul.f32 %v683_v12, %v1477_v3  ;;  %v706_v3 = vmul.f32 %v667_v7, %v1458_v36  ;;  %v702_v36 = vmul.f32 %v651_v0, %v1438_v22  ;;  %v698_v22 = vmul.f32 %v635_v28, %v1430_v20 }
 0x298   :  { %v1078_v13 = vpop.f32.mrf.mxu0 }
 0x299   :  { %v713_v14 = vmul.f32 %v1078_v13, %v472_v31 }
 0x29a   :  { %v686_v19 = vpop.f32.mrf.mxu0 }
 0x29b   :  { %1100 = vmatpush3.msra.mxu0 %v713_v14  ;;  %v711_v4 = vmul.f32 %v686_v19, %v1480_v8  ;;  %v707_v8 = vmul.f32 %v670_v10, %v1461_v38  ;;  %v703_v38 = vmul.f32 %v654_v2, %v1440_v17  ;;  %v699_v17 = vmul.f32 %v638_v62, %v1434_v16 }
 0x29c   :  { %1101 = vmatprep.subr.mxu0 %v1187_v15 }
 0x29d   :  { %1102 = vmatpush3.msra.mxu0 %v712_v23 }
 0x29e   :  { %1103 = vmatprep.subr.mxu0 %v1187_v15 }
 0x29f   :  { %1104 = vmatpush3.msra.mxu0 %v711_v4 }
 0x2a0   :  { %1105 = vmatprep.subr.mxu0 %v1187_v15 }
 0x2a1   :  { %1106 = vmatpush3.msra.mxu0 %v710_v24 }
 0x2a2   :  { %1107 = vmatprep.subr.mxu0 %v1187_v15 }
 0x2a3   :  { %1108 = vmatpush3.msra.mxu0 %v709_v27 }
 0x2a4   :  { %1109 = vmatprep.subr.mxu0 %v1187_v15 }
 0x2a5   :  { %1110 = vmatpush3.msra.mxu0 %v708_v26 }
 0x2a6   :  { %1111 = vmatprep.subr.mxu0 %v1187_v15 }
 0x2a7   :  { %1112 = vmatpush3.msra.mxu0 %v707_v8 }
 0x2a8   :  { %1113 = vmatprep.subr.mxu0 %v1187_v15 }
 0x2a9   :  { %1114 = vmatpush3.msra.mxu0 %v706_v3 }
 0x2aa   :  { %1115 = vmatprep.subr.mxu0 %v1187_v15 }
 0x2ab   :  { %1116 = vmatpush3.msra.mxu0 %v705_v55 }
 0x2ac   :  { %1117 = vmatprep.subr.mxu0 %v1187_v15 }
 0x2ad   :  { %1118 = vmatpush3.msra.mxu0 %v704_v51 }
 0x2ae   :  { %1119 = vmatprep.subr.mxu0 %v1187_v15 }
 0x2af   :  { %1120 = vmatpush3.msra.mxu0 %v703_v38 }
 0x2b0   :  { %1121 = vmatprep.subr.mxu0 %v1187_v15 }
 0x2b1   :  { %1122 = vmatpush3.msra.mxu0 %v702_v36 }
 0x2b2   :  { %1123 = vmatprep.subr.mxu0 %v1187_v15 }
 0x2b3   :  { %1124 = vmatpush3.msra.mxu0 %v701_v25 }
 0x2b4   :  { %1125 = vmatprep.subr.mxu0 %v1187_v15 }
 0x2b5   :  { %1126 = vmatpush3.msra.mxu0 %v700_v5 }
 0x2b6   :  { %1127 = vmatprep.subr.mxu0 %v1187_v15 }
 0x2b7   :  { %1128 = vmatpush3.msra.mxu0 %v699_v17 }
 0x2b8   :  { %1129 = vmatprep.subr.mxu0 %v1187_v15 }
 0x2b9   :  { %1130 = vmatpush3.msra.mxu0 %v698_v22 }
 0x2ba   :  { %1132 = vmatmul.mubr.f32.vlgmr.msra.gmra.mxu0 %v779_v29 }
 0x37a   :  { %v862_v18 = vpop.f32.mrf.mxu0 }
 0x37b   :  { %v866_v30 = vmul.f32 0.0625, %v862_v18 }
 0x37c   :  { %v1133_v16 = vpop.f32.mrf.mxu0 }
 0x37d   :  { %v868_v31 = vadd.f32 %v867_v21, %v866_v30 }
 0x37f   :  { %869 = vst [vmem:[#allocation4] sm:$0x1] %v868_v31 }
 0x380   :  { %1175 = shalt.err (!%p1172_p4)
}
 0x381   :  { %879 = dma.vmem_to_hbm [thread:$0]  %s877_s22, 16, %s1538_s8, [#allocation5]  }
 0x382   :  { %1184 = dma.done.wait [#allocation5], 16  }
 0x383   :  { %1185 = vsyncadd [#allocation5], 4294967280 }
 0x384   :  { %883 = vsyncpa [#allocation5], 1 }

</bundles_post_ra>
